<compile_context>
chip_gen: v6e
topology: v6e:2x2x1
jax: 0.10.0
libtpu: 0.0.40
codegen_flags: <defaults>
</compile_context>

<pallas_src>
import jax
import jax.numpy as jnp
from jax.experimental import pallas as pl
from jax.experimental.pallas import tpu as pltpu


def _square_kernel(x_ref, o_ref):
    # Elementwise hot path: y = x * x  (pure VPU work, no dtype casts).
    # NOTE: for integer dtypes this wraps on overflow, same as a plain
    # in-dtype multiply would.
    x = x_ref[...]
    o_ref[...] = x * x


def _sublane_pack(dtype) -> int:
    """Rows per packed sublane group: 8 for f32, 16 for bf16, 32 for int8."""
    itemsize = jnp.dtype(dtype).itemsize
    return 8 * max(1, 4 // itemsize)


def _chip_params():
    """(block_budget_bytes, vmem_limit_bytes, small_path_budget_bytes)."""
    try:
        vmem = int(pltpu.get_tpu_info().vmem_capacity_bytes)
    except Exception:
        vmem = 64 * 1024 * 1024  # conservative fallback
    if vmem >= 96 * 1024 * 1024:
        # v5e / v6e (128 MiB VMEM): big blocks amortize the ~0.35us/step
        # overhead; 2 operands x 2 buffers x 16 MiB = 64 MiB working set.
        return 16 * 1024 * 1024, 80 * 1024 * 1024, 8 * 1024 * 1024
    # v7x (64 MiB per TensorCore): keep compile headroom (never request the
    # whole physical VMEM) and push mid-size slabs onto a "parallel" grid so
    # both TCs stream HBM.
    return 8 * 1024 * 1024, 48 * 1024 * 1024, 2 * 1024 * 1024


_BLOCK_BUDGET, _VMEM_LIMIT, _SMALL_BUDGET = _chip_params()


@jax.jit
def end_square_forward(x: jax.Array) -> jax.Array:
    """Pallas implementation of EndSquareModel.forward (elementwise square).

    Accepts any shape/dtype; presents the data to the kernel as a lane-dense
    2-D slab using only free (bitcast) reshapes on the common paths.
    """
    orig_shape = x.shape
    dtype = x.dtype
    itemsize = jnp.dtype(dtype).itemsize
    total = int(x.size)
    if total == 0:
        return x

    pack = _sublane_pack(dtype)
    slab_bytes = total * itemsize

    # ---- choose a lane-dense 2-D view (free reshapes; no pad/slice passes on
    #      the aligned paths) ------------------------------------------------
    pad = 0
    if x.ndim >= 2 and orig_shape[-1] % 128 == 0:
        # conv/matmul-style inputs: collapse leading dims, keep the already
        # lane-dense last dim.
        x2d = x.reshape(-1, orig_shape[-1])
    elif total % 128 == 0:
        x2d = x.reshape(-1, 128)
    elif slab_bytes <= _SMALL_BUDGET:
        # Small ragged input: a full-array VMEM block accepts any shape, so no
        # HBM-side padding is needed at all (Mosaic pads inside VMEM only).
        x2d = x.reshape(1, total)
    else:
        # TODO(synk): large ragged input (x.size % 128 != 0) — pad the tail to
        # a lane multiple; this costs one extra HBM pass and is the only
        # remaining non-free wrapper path.
        pad = (-total) % 128
        x2d = jnp.pad(x.reshape(-1), (0, pad)).reshape(-1, 128)

    rows, cols = x2d.shape
    cost = pl.CostEstimate(
        flops=rows * cols,                     # one multiply per element
        transcendentals=0,
        bytes_accessed=2 * rows * cols * itemsize,
    )

    if rows * cols * itemsize <= _SMALL_BUDGET:
        # Small path: single full-array block resident in VMEM, no grid
        # scaffolding at all.
        out2d = pl.pallas_call(
            _square_kernel,
            out_shape=jax.ShapeDtypeStruct((rows, cols), dtype),
            in_specs=[pl.BlockSpec(memory_space=pltpu.MemorySpace.VMEM)],
            out_specs=pl.BlockSpec(memory_space=pltpu.MemorySpace.VMEM),
            cost_estimate=cost,
        )(x2d)
    else:
        # Large path: 2-D row/lane tiled grid, double-buffered, both axes
        # "parallel" (megacore sharding on multi-TC parts).  Ragged edges are
        # handled by pl.cdiv partial blocks (masked stores), not padding.
        tc = cols if cols <= 2048 else 2048          # lane tile, multiple of 128
        max_tr = max(1, _BLOCK_BUDGET // (tc * itemsize))
        if max_tr >= rows:
            tr = rows                                 # full dim: always legal
        else:
            tr = max(pack, (max_tr // pack) * pack)   # sublane-packed tile
        grid = (pl.cdiv(rows, tr), pl.cdiv(cols, tc))
        out2d = pl.pallas_call(
            _square_kernel,
            out_shape=jax.ShapeDtypeStruct((rows, cols), dtype),
            grid=grid,
            in_specs=[pl.BlockSpec((tr, tc), lambda i, j: (i, j))],
            out_specs=pl.BlockSpec((tr, tc), lambda i, j: (i, j)),
            cost_estimate=cost,
            compiler_params=pltpu.CompilerParams(
                dimension_semantics=("parallel", "parallel"),
                vmem_limit_bytes=_VMEM_LIMIT,
            ),
        )(x2d)

    out_flat = out2d.reshape(-1)
    if pad:
        out_flat = out_flat[:total]
    return out_flat.reshape(orig_shape)


if __name__ == "__main__":
    key = jax.random.PRNGKey(0)
    # Small NCHW input consistent with a conv-style module interface.
    x = jax.random.normal(key, (2, 4, 16, 16), dtype=jnp.float32)

    y = end_square_forward(x)
    y = jax.block_until_ready(y)

    # Correctness check against the inferred reference (x ** 2).
    ref = x * x
    assert y.shape == x.shape and y.dtype == x.dtype
    assert jnp.allclose(y, ref, atol=1e-6, rtol=1e-6)

    print("KERNEL_OK")
</pallas_src>

<mosaic_0001>
module attributes {stable_mosaic.version = 11 : i64} {
  func.func @_square_kernel(%arg0: memref<16x128xf32, #tpu.memory_space<vmem>>, %arg1: memref<16x128xf32, #tpu.memory_space<vmem>>) attributes {dimension_semantics = [], scalar_prefetch = 0 : i64, scratch_operands = 0 : i64, tpu.core_type = #tpu.core_type<tc>} {
    %c0 = arith.constant 0 : index
    %c0_0 = arith.constant 0 : index
    %0 = vector.load %arg0[%c0, %c0_0] : memref<16x128xf32, #tpu.memory_space<vmem>>, vector<16x128xf32>
    %1 = arith.mulf %0, %0 : vector<16x128xf32>
    %c0_1 = arith.constant 0 : index
    %c0_2 = arith.constant 0 : index
    %2 = vector.load %arg1[%c0_1, %c0_2] : memref<16x128xf32, #tpu.memory_space<vmem>>, vector<16x128xf32>
    tpu.vector_store %arg1[%c0_1, %c0_2], %1 {strides = array<i32>} : memref<16x128xf32, #tpu.memory_space<vmem>>, vector<16x128xf32>,
    return
  }
}

</mosaic_0001>

<bundles_post_ra>
// kernel: end_square_forward.1
= control target key start
LH: loop header
LB: loop body
LE: loop exit
PB: predicated region body
PF: predicated region fallthrough
CT: control target
= control target key end

     0   :  { %s40_s0 = inlined_call_operand.vmem [shape: f32[16,128], index: 0, kind: input, shape index: {}]   ;;  %s41_s1 = inlined_call_operand.vmem [shape: f32[16,128], index: 1, kind: output, shape index: {}]  }
   0x1   :  { %v8_v0 = vld [vmem:[%s40_s0] sm:$0xff]  ;;  %v9_v1 = vld [vmem:[%s40_s0 + $0x8] sm:$0xff] }
   0x2   :  { %v10_v2 = vmul.f32 %v8_v0, %v8_v0  ;;  %v11_v3 = vmul.f32 %v9_v1, %v9_v1 }
   0x4   :  { %12 = vst [vmem:[%s41_s1] sm:$0xff] %v10_v2  ;;  %13 = vst [vmem:[%s41_s1 + $0x8] sm:$0xff] %v11_v3 }

</bundles_post_ra>
